<compile_context>
chip_gen: v5e
topology: v5e:2x2
jax: 0.10.0
libtpu: 0.0.40
codegen_flags: <defaults>
</compile_context>

<pallas_src>
import functools
import math

import jax
import jax.numpy as jnp
from jax.experimental import pallas as pl
from jax.experimental.pallas import tpu as pltpu


def _round_up(x: int, m: int) -> int:
    return ((x + m - 1) // m) * m


def _vmem_budget_bytes() -> int:
    """Usable per-core VMEM budget, leaving headroom for compiler scratch."""
    try:
        cap = int(pltpu.get_tpu_info().vmem_capacity_bytes)
    except Exception:
        cap = 64 << 20          # conservative default = v7x per-TC VMEM
    # ~56 MiB on v7x (64 MiB), ~112 MiB on v5e/v6e (128 MiB).
    return int(max(16 << 20, min(cap - (8 << 20), int(cap * 0.875), 112 << 20)))


def _select_tiles(M, H, w_itemsize, budget, *, max_tile_m=None, tile_n=None):
    """Pick (tile_m, tile_n, n_tiled) under the VMEM budget.

    Path A (tile_n == H): weight+bias resident (single-buffered), x/out stream.
    Path B (tile_n <  H): weight column panels stream over a 2nd grid axis.
    """
    act = 4                                          # x / out / residual / bias are f32
    m_cap = max(8, (min(M, 2048) // 8) * 8)          # never exceed data; 2048-row cap

    if tile_n is None:
        w_resident = H * H * w_itemsize + H * act    # single-buffered w + b
        if w_resident <= budget // 3:
            tile_n = H
        else:
            # Lane-dense (multiple-of-128) weight panels, double-buffered, <= ~budget/3.
            tile_n = ((budget // 3) // (2 * H * w_itemsize)) // 128 * 128
            tile_n = max(128, min(tile_n, _round_up(H, 128)))
    tile_n = int(min(tile_n, H))
    if tile_n < H and tile_n % 128 != 0:             # keep panel stores lane-dense
        tile_n = min(_round_up(tile_n, 128), H)
    n_tiled = tile_n < H

    if n_tiled:
        fixed = 2 * (H * tile_n * w_itemsize + tile_n * act)      # w + b panels (2 bufs)
        per_row = 2 * H * act + 2 * tile_n * act + 2 * tile_n * act  # x, res, out streams
    else:
        fixed = H * H * w_itemsize + H * act                       # resident w + b (1 buf)
        per_row = 2 * H * act + 2 * H * act                        # x + out, double-buffered
    avail = max(budget - fixed, 1 << 20)
    tm = max(8, (avail // per_row) // 8 * 8)
    if not n_tiled:
        # ~4 MiB streamed x blocks already sit near the HBM roofline; bigger is waste.
        tm = min(tm, max(64, ((4 << 20) // (H * act)) // 8 * 8))
    tm = min(tm, m_cap)
    if max_tile_m is not None:
        tm = min(tm, max(8, (int(max_tile_m) // 8) * 8))
    return int(max(8, tm)), int(tile_n), n_tiled


def _residual_linear_kernel(*refs, compute_dtype, n_tiled):
    # Path A refs: x(tile_m,H), w(H,H), b(1,H), out(tile_m,H)
    # Path B refs: x(tile_m,H), w(H,tile_n), b(1,tile_n), xres(tile_m,tile_n), out(tile_m,tile_n)
    if n_tiled:
        x_ref, w_ref, b_ref, xres_ref, o_ref = refs
    else:
        x_ref, w_ref, b_ref, o_ref = refs
    x = x_ref[...]                                            # f32 rows
    y = jnp.dot(x.astype(compute_dtype), w_ref[...],          # MXU (bf16 or f32 operands)
                preferred_element_type=jnp.float32)           # f32 accumulation
    res = xres_ref[...] if n_tiled else x
    # bias add + residual add stay in f32.
    o_ref[...] = (y + b_ref[...] + res.astype(jnp.float32)).astype(o_ref.dtype)


def residual_forward(x, w, b, *, compute_dtype=jnp.bfloat16, max_tile_m=None, tile_n=None):
    """Residual(Linear) forward: Linear(x) + x, fused in one Pallas TPU kernel.

    x: (B, S, H);  w: (H, H) laid out so y = x @ w;  b: (H,).
    compute_dtype: dtype fed to the MXU (bf16 recommended for speed / VMEM; pass
      jnp.float32 to reproduce the f32 module numerics).  Accumulation, bias and
      residual adds are always f32.
    """
    B, S, H = x.shape
    M = B * S
    x2 = x.reshape(M, H)                               # contiguous reshape, no copy
    w_c = w.astype(compute_dtype)                      # pre-cast once (resident block is bf16-sized)
    b2 = b.reshape(1, H).astype(jnp.float32)

    budget = _vmem_budget_bytes()
    w_item = jnp.dtype(compute_dtype).itemsize
    tile_m, tile_n, n_tiled = _select_tiles(
        M, H, w_item, budget, max_tile_m=max_tile_m, tile_n=tile_n)

    grid = (pl.cdiv(M, tile_m), pl.cdiv(H, tile_n))    # ragged edges masked by Pallas

    kernel = functools.partial(_residual_linear_kernel,
                               compute_dtype=compute_dtype, n_tiled=n_tiled)

    # x row block: streamed over i, revisited (not re-DMA'd) across j.
    x_spec = pl.BlockSpec((tile_m, H), lambda i, j: (i, 0))
    out_spec = pl.BlockSpec((tile_m, tile_n), lambda i, j: (i, j))

    cost = pl.CostEstimate(
        flops=2 * M * H * H,
        transcendentals=0,
        bytes_accessed=(2 * M * H + (M * H if n_tiled else 0)) * 4
                       + H * H * w_item + H * 4,
    )

    def _call(single_buffer_resident):
        if n_tiled:
            in_specs = [
                x_spec,
                pl.BlockSpec((H, tile_n), lambda i, j: (0, j)),        # w column panel
                pl.BlockSpec((1, tile_n), lambda i, j: (0, j)),        # bias panel
                pl.BlockSpec((tile_m, tile_n), lambda i, j: (i, j)),   # residual panel
            ]
            args = (x2, w_c, b2, x2)
        else:
            if single_buffer_resident:
                # Constant-index blocks: single buffer, never re-fetched.
                w_spec = pl.BlockSpec((H, H), lambda i, j: (0, 0),
                                      pipeline_mode=pl.Buffered(1))
                b_spec = pl.BlockSpec((1, H), lambda i, j: (0, 0),
                                      pipeline_mode=pl.Buffered(1))
            else:
                w_spec = pl.BlockSpec((H, H), lambda i, j: (0, 0))
                b_spec = pl.BlockSpec((1, H), lambda i, j: (0, 0))
            in_specs = [x_spec, w_spec, b_spec]
            args = (x2, w_c, b2)
        return pl.pallas_call(
            kernel,
            out_shape=jax.ShapeDtypeStruct((M, H), x.dtype),
            grid_spec=pltpu.PrefetchScalarGridSpec(
                num_scalar_prefetch=0, grid=grid,
                in_specs=in_specs, out_specs=out_spec),
            compiler_params=pltpu.CompilerParams(
                dimension_semantics=("parallel", "arbitrary"),
                vmem_limit_bytes=int(budget)),
            cost_estimate=cost,
        )(*args)

    if n_tiled:
        out = _call(False)
    else:
        try:
            out = _call(True)      # single-buffered resident w/b (saves H*H*itemsize VMEM)
        except Exception:
            # TODO(synk): pl.Buffered(1) unsupported on this jax/libtpu combo — fall
            # back to the default double-buffered resident weight block.
            out = _call(False)
    return out.reshape(B, S, H)


if __name__ == "__main__":
    key = jax.random.PRNGKey(0)
    k1, k2, k3, k4, k5, k6 = jax.random.split(key, 6)

    # ---- Case 1: small H (not a multiple of 128), ragged M tiles, resident-w path ----
    B, S, H = 2, 13, 32                    # M = 26 -> ragged last row-tile with tile_m = 8
    bound = 1.0 / math.sqrt(H)
    x = jax.random.normal(k1, (B, S, H), dtype=jnp.float32)
    w = jax.random.uniform(k2, (H, H), dtype=jnp.float32, minval=-bound, maxval=bound)
    b = jax.random.uniform(k3, (H,), dtype=jnp.float32, minval=-bound, maxval=bound)

    # Exact-semantics path (f32 matmul) vs. plain-JAX reference.
    out_f32 = residual_forward(x, w, b, compute_dtype=jnp.float32, max_tile_m=8)
    jax.block_until_ready(out_f32)
    ref_f32 = jnp.einsum("bsh,hk->bsk", x, w) + b + x
    assert out_f32.shape == x.shape
    assert jnp.allclose(out_f32, ref_f32, atol=1e-5, rtol=1e-5)

    # Fast path: bf16 MXU matmul with f32 accumulation + f32 bias/residual adds.
    out_bf16 = residual_forward(x, w, b, compute_dtype=jnp.bfloat16, max_tile_m=8)
    jax.block_until_ready(out_bf16)
    ref_bf16 = (jnp.einsum("bsh,hk->bsk", x.astype(jnp.bfloat16), w.astype(jnp.bfloat16),
                           preferred_element_type=jnp.float32) + b + x)
    assert jnp.allclose(out_bf16, ref_bf16, atol=1e-4, rtol=1e-4)
    assert jnp.allclose(out_bf16, ref_f32, atol=5e-2, rtol=5e-2)

    # ---- Case 2: lane-dense H with forced feature (N) tiling (large-H / v7x path) ----
    B2, S2, H2 = 2, 8, 256
    bound2 = 1.0 / math.sqrt(H2)
    x_b = jax.random.normal(k4, (B2, S2, H2), dtype=jnp.float32)
    w_b = jax.random.uniform(k5, (H2, H2), dtype=jnp.float32, minval=-bound2, maxval=bound2)
    b_b = jax.random.uniform(k6, (H2,), dtype=jnp.float32, minval=-bound2, maxval=bound2)

    out_nt = residual_forward(x_b, w_b, b_b, compute_dtype=jnp.bfloat16, tile_n=128)
    jax.block_until_ready(out_nt)
    ref_nt = (jnp.einsum("bsh,hk->bsk", x_b.astype(jnp.bfloat16), w_b.astype(jnp.bfloat16),
                         preferred_element_type=jnp.float32) + b_b + x_b)
    assert out_nt.shape == x_b.shape
    assert jnp.allclose(out_nt, ref_nt, atol=1e-4, rtol=1e-4)

    print("KERNEL_OK")
</pallas_src>

<mosaic_0001>
module attributes {stable_mosaic.version = 11 : i64} {
  func.func @_residual_linear_kernel(%arg0: i32, %arg1: i32, %arg2: memref<8x32xf32, #tpu.memory_space<vmem>>, %arg3: memref<32x32xf32, #tpu.memory_space<vmem>>, %arg4: memref<1x32xf32, #tpu.memory_space<vmem>>, %arg5: memref<8x32xf32, #tpu.memory_space<vmem>>) attributes {dimension_semantics = [#tpu.dimension_semantics<parallel>, #tpu.dimension_semantics<arbitrary>], iteration_bounds = array<i64: 4, 1>, scalar_prefetch = 0 : i64, scratch_operands = 0 : i64, tpu.core_type = #tpu.core_type<tc>, window_params = [{transform_indices = @transform_0, window_bounds = array<i64: 8, 32>}, {pipeline_mode = #tpu.pipeline_mode<synchronous>, transform_indices = @transform_1, window_bounds = array<i64: 32, 32>}, {pipeline_mode = #tpu.pipeline_mode<synchronous>, transform_indices = @transform_2, window_bounds = array<i64: 1, 32>}, {transform_indices = @transform_3, window_bounds = array<i64: 8, 32>}]} {
    %c0 = arith.constant 0 : index
    %c0_0 = arith.constant 0 : index
    %0 = vector.load %arg2[%c0, %c0_0] : memref<8x32xf32, #tpu.memory_space<vmem>>, vector<8x32xf32>
    %c0_1 = arith.constant 0 : index
    %c0_2 = arith.constant 0 : index
    %1 = vector.load %arg3[%c0_1, %c0_2] : memref<32x32xf32, #tpu.memory_space<vmem>>, vector<32x32xf32>
    %cst = arith.constant dense<0.000000e+00> : vector<8x32xf32>
    %2 = tpu.matmul %0, %1, %cst {dimension_numbers = #tpu.dot_dimension_numbers<[1], [0], [0], [1], [0, 0, 1, 1], [], []>} : vector<8x32xf32>, vector<32x32xf32>, vector<8x32xf32> -> vector<8x32xf32>
    %c0_3 = arith.constant 0 : index
    %c0_4 = arith.constant 0 : index
    %3 = vector.load %arg4[%c0_3, %c0_4] : memref<1x32xf32, #tpu.memory_space<vmem>>, vector<1x32xf32>
    %4 = vector.broadcast %3 : vector<1x32xf32> to vector<8x32xf32>
    %5 = arith.addf %2, %4 : vector<8x32xf32>
    %6 = arith.addf %5, %0 : vector<8x32xf32>
    %c0_5 = arith.constant 0 : index
    %c0_6 = arith.constant 0 : index
    %7 = vector.load %arg5[%c0_5, %c0_6] : memref<8x32xf32, #tpu.memory_space<vmem>>, vector<8x32xf32>
    tpu.vector_store %arg5[%c0_5, %c0_6], %6 {strides = array<i32>} : memref<8x32xf32, #tpu.memory_space<vmem>>, vector<8x32xf32>,
    return
  }
  func.func @transform_0(%arg0: i32, %arg1: i32) -> (i32, i32) {
    %c0_i32 = arith.constant 0 : i32
    %c0_i32_0 = arith.constant 0 : i32
    return %arg0, %c0_i32 : i32, i32
  }
  func.func @transform_1(%arg0: i32, %arg1: i32) -> (i32, i32) {
    %c0_i32 = arith.constant 0 : i32
    %c0_i32_0 = arith.constant 0 : i32
    %c0_i32_1 = arith.constant 0 : i32
    return %c0_i32, %c0_i32_0 : i32, i32
  }
  func.func @transform_2(%arg0: i32, %arg1: i32) -> (i32, i32) {
    %c0_i32 = arith.constant 0 : i32
    %c0_i32_0 = arith.constant 0 : i32
    %c0_i32_1 = arith.constant 0 : i32
    return %c0_i32, %c0_i32_0 : i32, i32
  }
  func.func @transform_3(%arg0: i32, %arg1: i32) -> (i32, i32) {
    %c0_i32 = arith.constant 0 : i32
    return %arg0, %arg1 : i32, i32
  }
}

module attributes {stable_mosaic.version = 11 : i64} {
  func.func @_residual_linear_kernel(%arg0: i32, %arg1: i32, %arg2: memref<8x32xf32, #tpu.memory_space<vmem>>, %arg3: memref<32x32xf32, #tpu.memory_space<vmem>>, %arg4: memref<1x32xf32, #tpu.memory_space<vmem>>, %arg5: memref<8x32xf32, #tpu.memory_space<vmem>>) attributes {dimension_semantics = [#tpu.dimension_semantics<parallel>, #tpu.dimension_semantics<arbitrary>], iteration_bounds = array<i64: 4, 1>, scalar_prefetch = 0 : i64, scratch_operands = 0 : i64, tpu.core_type = #tpu.core_type<tc>, window_params = [{transform_indices = @transform_0, window_bounds = array<i64: 8, 32>}, {pipeline_mode = #tpu.pipeline_mode<synchronous>, transform_indices = @transform_1, window_bounds = array<i64: 32, 32>}, {pipeline_mode = #tpu.pipeline_mode<synchronous>, transform_indices = @transform_2, window_bounds = array<i64: 1, 32>}, {transform_indices = @transform_3, window_bounds = array<i64: 8, 32>}]} {
    %c0 = arith.constant 0 : index
    %c0_0 = arith.constant 0 : index
    %0 = vector.load %arg2[%c0, %c0_0] : memref<8x32xf32, #tpu.memory_space<vmem>>, vector<8x32xf32>
    %c0_1 = arith.constant 0 : index
    %c0_2 = arith.constant 0 : index
    %1 = vector.load %arg3[%c0_1, %c0_2] : memref<32x32xf32, #tpu.memory_space<vmem>>, vector<32x32xf32>
    %cst = arith.constant dense<0.000000e+00> : vector<8x32xf32>
    %2 = tpu.matmul %0, %1, %cst {dimension_numbers = #tpu.dot_dimension_numbers<[1], [0], [0], [1], [0, 0, 1, 1], [], []>} : vector<8x32xf32>, vector<32x32xf32>, vector<8x32xf32> -> vector<8x32xf32>
    %c0_3 = arith.constant 0 : index
    %c0_4 = arith.constant 0 : index
    %3 = vector.load %arg4[%c0_3, %c0_4] : memref<1x32xf32, #tpu.memory_space<vmem>>, vector<1x32xf32>
    %4 = vector.broadcast %3 : vector<1x32xf32> to vector<8x32xf32>
    %5 = arith.addf %2, %4 : vector<8x32xf32>
    %6 = arith.addf %5, %0 : vector<8x32xf32>
    %c0_5 = arith.constant 0 : index
    %c0_6 = arith.constant 0 : index
    %7 = vector.load %arg5[%c0_5, %c0_6] : memref<8x32xf32, #tpu.memory_space<vmem>>, vector<8x32xf32>
    tpu.vector_store %arg5[%c0_5, %c0_6], %6 {strides = array<i32>} : memref<8x32xf32, #tpu.memory_space<vmem>>, vector<8x32xf32>,
    return
  }
  func.func @transform_0(%arg0: i32, %arg1: i32) -> (i32, i32) {
    %c0_i32 = arith.constant 0 : i32
    %c0_i32_0 = arith.constant 0 : i32
    return %arg0, %c0_i32 : i32, i32
  }
  func.func @transform_1(%arg0: i32, %arg1: i32) -> (i32, i32) {
    %c0_i32 = arith.constant 0 : i32
    %c0_i32_0 = arith.constant 0 : i32
    %c0_i32_1 = arith.constant 0 : i32
    return %c0_i32, %c0_i32_0 : i32, i32
  }
  func.func @transform_2(%arg0: i32, %arg1: i32) -> (i32, i32) {
    %c0_i32 = arith.constant 0 : i32
    %c0_i32_0 = arith.constant 0 : i32
    %c0_i32_1 = arith.constant 0 : i32
    return %c0_i32, %c0_i32_0 : i32, i32
  }
  func.func @transform_3(%arg0: i32, %arg1: i32) -> (i32, i32) {
    %c0_i32 = arith.constant 0 : i32
    return %arg0, %arg1 : i32, i32
  }
}

</mosaic_0001>

<bundles_post_ra>
// kernel: tpu_custom_call.1
= control target key start
LH: loop header
LB: loop body
LE: loop exit
PB: predicated region body
PF: predicated region fallthrough
CT: control target
= control target key end

     0   :  { %8 = vsyncpa [#allocation3], 0  ;;  %s767_s0 = inlined_call_operand.hbm [shape: f32[26,32], index: 0, kind: input, shape index: {}]   ;;  %s768_s1 = inlined_call_operand.hbm [shape: f32[32,32], index: 1, kind: input, shape index: {}]   ;;  %s769_s2 = inlined_call_operand.vmem [shape: f32[1,32], index: 2, kind: input, shape index: {}]   ;;  %s770_s3 = inlined_call_operand.hbm [shape: f32[26,32], index: 3, kind: output, shape index: {}]  }
   0x1   :  { %10 = vsyncpa [#allocation3 + $0x1], 0 }
   0x2   :  { %11 = vsyncpa [#allocation6], 0 }
   0x3   :  { %12 = vsyncpa [#allocation4], 0 }
   0x4   :  { %14 = vsyncpa [#allocation4 + $0x1], 0  ;;  %s623_s12 = smov 0   ;;  %s625_s13 = smov 0  }
   0x5   :  { %s627_s14 = smov 0   ;;  %s629_s15 = smov 0  }
   0x6   :  { %s631_s16 = smov 0   ;;  %s633_s17 = smov 0  }
   0x7 LB: > { %s360_s18 = sadd.s32 4294967295, %s598_s17   ;;  %p362_p0 = scmp.ge.s32.totalorder %s598_s17, 1  ;;  %s598_s17 = sphi %s633_s17, %s20_s17   ;;  %s594_s16 = sphi %s631_s16, %s781_s16   ;;  %s590_s15 = sphi %s629_s15, %s780_s15   ;;  %s586_s14 = sphi %s627_s14, %s779_s14   ;;  %s582_s13 = sphi %s625_s13, %s778_s13   ;;  %s578_s12 = sphi %s623_s12, %s777_s12  }
   0x8   : > { %p655_p1 = scmp.eq.s32.totalorder %s360_s18, 0  ;;  %p133_p2 = scmp.lt.s32.totalorder %s598_s17, 5 }
   0x9   : > { %s144_s22 = sshll.u32 %s768_s1, 4  ;;  %s600_s24 = smov [#allocation5]   ;;  %s145_s22 = int_to_ptr.hbm [resolvable:$true] %s144_s22 }
   0xa   : > { %p663_p3 = pnand %p362_p0, %p133_p2  ;;  %s146_s25 = sshll.u32 %s600_s24, 4  ;;  %s147_s25 = int_to_ptr.vmem [resolvable:$true] %s146_s25 }
   0xb   : > { %s601_s26 = smov 128   ;;  %s602_s27 = smov 8  }
   0xc   : > { %p384_p4 = pneg %p663_p3  ;;  %s361_s28 = sadd.s32 4294967294, %s598_s17  }
   0xd   : > { %s32_s29 = sadd.s32 1, %s594_s16  ;;  %s39_s30 = sadd.s32 1, %s586_s14 }
   0xe   : > { %p385_p5 = pnand %p384_p4, %p655_p1  ;;  %p34_p6 = scmp.ge.s32.totalorder %s32_s29, 4 }
   0xf   : > { %p46_p7 = scmp.ne.s32.totalorder %s586_s14, %s582_s13  ;;  %p47_p8 = scmp.eq.s32.totalorder %s598_s17, 0 }
  0x10   : > { %387 = dma.hbm_to_vmem [thread:$0]  (!%p385_p5), %s145_s22, 512, %s147_s25, [#allocation6], %s601_s26, %s601_s26, %s602_s27  }
  0x11   : > { %p52_p9 = scmp.ne.s32.totalorder %s582_s13, %s578_s12  ;;  %s783_s29 = smov (%p34_p6, %s32_s29), 0 }
  0x12   : > { %p681_p10 = por %p47_p8, %p46_p7  ;;  %s36_s6 = ssub.s32 %s594_s16, %s783_s29 }
  0x13   : > { %p687_p11 = por %p655_p1, %p52_p9  ;;  %p120_p12 = scmp.eq.s32.totalorder %s360_s18, 3 }
  0x14   : > { %p37_p13 = scmp.eq.s32.totalorder %s36_s6, 0  ;;  %p126_p0 = scmp.eq.s32.totalorder %s361_s28, 3 }
  0x15   : > { %p693_p2 = por %p120_p12, %p46_p7  ;;  %p397_p4 = scmp.lt.s32.totalorder %s598_s17, 4 }
  0x16   : > { %s699_s8 = scalar_select %p37_p13, %s586_s14, %s39_s30  }
  0x17   : > { %p701_p5 = por %p126_p0, %p52_p9  ;;  %s163_s10 = sand.u32 1, %s586_s14  }
  0x18   : > { %s365_s11 = sshll.u32 %s163_s10, 3  ;;  %s366_s20 = sshll.u32 %s594_s16, 3 }
  0x19   : > { %s171_s18 = scalar_lea.hbm %s767_s0, %s366_s20  ;;  %s167_s24 = scalar_lea.vmem [#allocation2], %s365_s11 }
  0x1a   : > { %s175_s25 = sshll.u32 %s167_s24, 4  ;;  %s173_s26 = sshll.u32 %s171_s18, 4  ;;  %s176_s25 = int_to_ptr.vmem [resolvable:$true] %s175_s25  ;;  %s174_s26 = int_to_ptr.hbm [resolvable:$true] %s173_s26 }
  0x1b   : > { %p389_p6 = pnand %p397_p4, %p681_p10  ;;  %s164_s27 = scalar_lea.sflag [#allocation3], %s163_s10 }
  0x1c   : > { %184 = sbr.rel (%p663_p3) target bundleno = 177 (0xb1), region = 32  ;;  %s715_s28 = sand.u32 (!%p663_p3), 1, %s582_s13  }
  0x1d   : > { %391 = dma.hbm_to_vmem [thread:$0]  (!%p389_p6), %s174_s26, 128, %s176_s25, %s164_s27  }
  0x1e   : > { %s368_s30 = sshll.u32 (!%p663_p3), %s715_s28, 3  ;;  %s187_s6 = scalar_lea.sflag (!%p663_p3), [#allocation3], %s715_s28 }
  0x1f   : > { %s190_s11 = scalar_lea.vmem (!%p663_p3), [#allocation2], %s368_s30 }
  0x21   : > { %565 = dma.done.wait (%p687_p11), %s187_s6, 128  }
  0x22   : > { %567 = vsyncadd (%p687_p11), %s187_s6, 4294967168 }
  0x23   : > { %569 = dma.done.wait (%p655_p1), [#allocation6], 512  }
  0x24   : > { %571 = vsyncadd (%p655_p1), [#allocation6], 4294966784  ;;  %v223_v0 = vld [vmem:[#allocation5 + $0x18] sm:$0xff]  ;;  %v222_v1 = vld [vmem:[#allocation5 + $0x10] sm:$0xff]  ;;  %vm228_vm0 = vcmask 261120   ;;  %s373_s23 = sshll.u32 %s590_s15, 3 }
  0x25   : > { %244 = vmatpush.msra.mxu0 %v223_v0  ;;  %v221_v2 = vld [vmem:[#allocation5 + $0x8] sm:$0xff]  ;;  %v220_v3 = vld [vmem:[#allocation5] sm:$0xff]  ;;  %v219_v4 = vld [vmem:[%s190_s11] sm:$0xff]  ;;  %s266_s20 = scalar_lea.hbm %s770_s3, %s373_s23  ;;  %s218_s21 = scalar_lea.vmem [#allocation7], %s368_s30 }
  0x26   : > { %v451_v5 = vld [vmem:[%s769_s2] ss:$0 sm:$0xff]  ;;  %s268_s22 = sshll.u32 %s218_s21, 4  ;;  %s270_s18 = sshll.u32 %s266_s20, 4  ;;  %s269_s22 = int_to_ptr.vmem [resolvable:$true] %s268_s22  ;;  %s271_s18 = int_to_ptr.hbm [resolvable:$true] %s270_s18 }
  0x27   : > { %245 = vmatpush.msra.mxu0 %v222_v1  ;;  %s255_s24 = scalar_lea.sflag [#allocation4], %s715_s28  ;;  %s526_s15 = sshra.s32 %s271_s18, 4  ;;  %s527_s15 = int_to_ptr.hbm [resolvable:$true] %s526_s15 }
  0x28   : > { %s528_s25 = scalar_lea.hbm %s527_s15, 8  ;;  %s532_s6 = scalar_lea.hbm %s770_s3, 32 }
  0x29   : > { %246 = vmatpush.msra.mxu0 %v221_v2  ;;  %p529_p1 = scmp.ne.s32.totalorder %s527_s15, %s528_s25  ;;  %p533_p8 = scmp.lt.s32.totalorder %s527_s15, %s770_s3 }
  0x2a   : > { %p534_p9 = scmp.lt.s32.totalorder %s532_s6, %s528_s25 }
  0x2b   : > { %247 = vmatpush.msra.mxu0 %v220_v3  ;;  %p530_p3 = pnand %p529_p1, %p693_p2 }
  0x2c   : > { %371 = vmatmul.msk.f32.vlgmr.msra.gmra.mxu0 %vm228_vm0, %v219_v4  ;;  %p535_p10 = por %p534_p9, %p533_p8 }
  0x2d   : > { %p531_p7 = pneg %p530_p3 }
  0x2f   : > { %p536_p11 = pnand %p535_p10, %p531_p7 }
  0xa9   : > { %v249_v6 = vpop.f32.mrf.mxu0 }
  0xaa   : > { %v250_v7 = vadd.f32 %v451_v5, %v249_v6 }
  0xac   : > { %v252_v8 = vadd.f32 %v250_v7, %v219_v4 }
  0xae   : > { %253 = vst.msk [vmem:[%s218_s21] sm:$0xff] %vm228_vm0, %v252_v8 }
  0xaf   : > { %539 = shalt.err (!%p536_p11)
}
  0xb0   : > { %382 = dma.vmem_to_hbm [thread:$0]  (%p693_p2), %s269_s22, 128, %s271_s18, %s255_s24  }
  0xb1 PF: > { %p399_p12 = scmp.ge.s32.totalorder %s598_s17, 2  ;;  %s282_s28 = sand.u32 1, %s578_s12  }
  0xb2   : > { %s283_s23 = scalar_lea.sflag [#allocation4], %s282_s28 }
  0xb3   : > { %p393_p13 = pnand %p399_p12, %p701_p5 }
  0xb5   : > { %p394_p0 = pneg %p393_p13 }
  0xb7   : > { %573 = dma.done.wait (%p394_p0), %s283_s23, 128  }
  0xb8   : > { %575 = vsyncadd (%p394_p0), %s283_s23, 4294967168  ;;  %s20_s17 = sadd.s32 1, %s598_s17   ;;  %s777_s12 = smov %s582_s13 }
  0xb9   : > { %p17_p4 = scmp.ge.s32.totalorder %s20_s17, 6   ;;  %s778_s13 = smov %s586_s14 }
  0xba   : > { %s779_s14 = smov %s699_s8  ;;  %s780_s15 = smov %s594_s16 }
  0xbb   : > { %s781_s16 = smov %s783_s29  ;;  %19 = sbr.rel (!%p17_p4) target bundleno = 7 (0x7), region = 81 }
  0xc0   :  { %289 = vsyncpa [#allocation3], 1 }
  0xc1   :  { %291 = vsyncpa [#allocation3 + $0x1], 1 }
  0xc2   :  { %292 = vsyncpa [#allocation6], 1 }
  0xc3   :  { %293 = vsyncpa [#allocation4], 1 }
  0xc4   :  { %295 = vsyncpa [#allocation4 + $0x1], 1 }

// kernel: tpu_custom_call.1
= control target key start
LH: loop header
LB: loop body
LE: loop exit
PB: predicated region body
PF: predicated region fallthrough
CT: control target
= control target key end

     0   :  { %8 = vsyncpa [#allocation3], 0  ;;  %s767_s0 = inlined_call_operand.hbm [shape: f32[26,32], index: 0, kind: input, shape index: {}]   ;;  %s768_s1 = inlined_call_operand.hbm [shape: f32[32,32], index: 1, kind: input, shape index: {}]   ;;  %s769_s2 = inlined_call_operand.vmem [shape: f32[1,32], index: 2, kind: input, shape index: {}]   ;;  %s770_s3 = inlined_call_operand.hbm [shape: f32[26,32], index: 3, kind: output, shape index: {}]  }
   0x1   :  { %10 = vsyncpa [#allocation3 + $0x1], 0 }
   0x2   :  { %11 = vsyncpa [#allocation6], 0 }
   0x3   :  { %12 = vsyncpa [#allocation4], 0 }
   0x4   :  { %14 = vsyncpa [#allocation4 + $0x1], 0  ;;  %s623_s12 = smov 0   ;;  %s625_s13 = smov 0  }
   0x5   :  { %s627_s14 = smov 0   ;;  %s629_s15 = smov 0  }
   0x6   :  { %s631_s16 = smov 0   ;;  %s633_s17 = smov 0  }
   0x7 LB: > { %s360_s18 = sadd.s32 4294967295, %s598_s17   ;;  %p362_p0 = scmp.ge.s32.totalorder %s598_s17, 1  ;;  %s598_s17 = sphi %s633_s17, %s20_s17   ;;  %s594_s16 = sphi %s631_s16, %s781_s16   ;;  %s590_s15 = sphi %s629_s15, %s780_s15   ;;  %s586_s14 = sphi %s627_s14, %s779_s14   ;;  %s582_s13 = sphi %s625_s13, %s778_s13   ;;  %s578_s12 = sphi %s623_s12, %s777_s12  }
   0x8   : > { %p655_p1 = scmp.eq.s32.totalorder %s360_s18, 0  ;;  %p133_p2 = scmp.lt.s32.totalorder %s598_s17, 5 }
   0x9   : > { %s144_s22 = sshll.u32 %s768_s1, 4  ;;  %s600_s24 = smov [#allocation5]   ;;  %s145_s22 = int_to_ptr.hbm [resolvable:$true] %s144_s22 }
   0xa   : > { %p663_p3 = pnand %p362_p0, %p133_p2  ;;  %s146_s25 = sshll.u32 %s600_s24, 4  ;;  %s147_s25 = int_to_ptr.vmem [resolvable:$true] %s146_s25 }
   0xb   : > { %s601_s26 = smov 128   ;;  %s602_s27 = smov 8  }
   0xc   : > { %p384_p4 = pneg %p663_p3  ;;  %s361_s28 = sadd.s32 4294967294, %s598_s17  }
   0xd   : > { %s32_s29 = sadd.s32 1, %s594_s16  ;;  %s39_s30 = sadd.s32 1, %s586_s14 }
   0xe   : > { %p385_p5 = pnand %p384_p4, %p655_p1  ;;  %p34_p6 = scmp.ge.s32.totalorder %s32_s29, 4 }
   0xf   : > { %p46_p7 = scmp.ne.s32.totalorder %s586_s14, %s582_s13  ;;  %p47_p8 = scmp.eq.s32.totalorder %s598_s17, 0 }
  0x10   : > { %387 = dma.hbm_to_vmem [thread:$0]  (!%p385_p5), %s145_s22, 512, %s147_s25, [#allocation6], %s601_s26, %s601_s26, %s602_s27  }
  0x11   : > { %p52_p9 = scmp.ne.s32.totalorder %s582_s13, %s578_s12  ;;  %s783_s29 = smov (%p34_p6, %s32_s29), 0 }
  0x12   : > { %p681_p10 = por %p47_p8, %p46_p7  ;;  %s36_s6 = ssub.s32 %s594_s16, %s783_s29 }
  0x13   : > { %p687_p11 = por %p655_p1, %p52_p9  ;;  %p120_p12 = scmp.eq.s32.totalorder %s360_s18, 3 }
  0x14   : > { %p37_p13 = scmp.eq.s32.totalorder %s36_s6, 0  ;;  %p126_p0 = scmp.eq.s32.totalorder %s361_s28, 3 }
  0x15   : > { %p693_p2 = por %p120_p12, %p46_p7  ;;  %p397_p4 = scmp.lt.s32.totalorder %s598_s17, 4 }
  0x16   : > { %s699_s8 = scalar_select %p37_p13, %s586_s14, %s39_s30  }
  0x17   : > { %p701_p5 = por %p126_p0, %p52_p9  ;;  %s163_s10 = sand.u32 1, %s586_s14  }
  0x18   : > { %s365_s11 = sshll.u32 %s163_s10, 3  ;;  %s366_s20 = sshll.u32 %s594_s16, 3 }
  0x19   : > { %s171_s18 = scalar_lea.hbm %s767_s0, %s366_s20  ;;  %s167_s24 = scalar_lea.vmem [#allocation2], %s365_s11 }
  0x1a   : > { %s175_s25 = sshll.u32 %s167_s24, 4  ;;  %s173_s26 = sshll.u32 %s171_s18, 4  ;;  %s176_s25 = int_to_ptr.vmem [resolvable:$true] %s175_s25  ;;  %s174_s26 = int_to_ptr.hbm [resolvable:$true] %s173_s26 }
  0x1b   : > { %p389_p6 = pnand %p397_p4, %p681_p10  ;;  %s164_s27 = scalar_lea.sflag [#allocation3], %s163_s10 }
  0x1c   : > { %184 = sbr.rel (%p663_p3) target bundleno = 177 (0xb1), region = 32  ;;  %s715_s28 = sand.u32 (!%p663_p3), 1, %s582_s13  }
  0x1d   : > { %391 = dma.hbm_to_vmem [thread:$0]  (!%p389_p6), %s174_s26, 128, %s176_s25, %s164_s27  }
  0x1e   : > { %s368_s30 = sshll.u32 (!%p663_p3), %s715_s28, 3  ;;  %s187_s6 = scalar_lea.sflag (!%p663_p3), [#allocation3], %s715_s28 }
  0x1f   : > { %s190_s11 = scalar_lea.vmem (!%p663_p3), [#allocation2], %s368_s30 }
  0x21   : > { %565 = dma.done.wait (%p687_p11), %s187_s6, 128  }
  0x22   : > { %567 = vsyncadd (%p687_p11), %s187_s6, 4294967168 }
  0x23   : > { %569 = dma.done.wait (%p655_p1), [#allocation6], 512  }
  0x24   : > { %571 = vsyncadd (%p655_p1), [#allocation6], 4294966784  ;;  %v223_v0 = vld [vmem:[#allocation5 + $0x18] sm:$0xff]  ;;  %v222_v1 = vld [vmem:[#allocation5 + $0x10] sm:$0xff]  ;;  %vm228_vm0 = vcmask 261120   ;;  %s373_s23 = sshll.u32 %s590_s15, 3 }
  0x25   : > { %244 = vmatpush.msra.mxu0 %v223_v0  ;;  %v221_v2 = vld [vmem:[#allocation5 + $0x8] sm:$0xff]  ;;  %v220_v3 = vld [vmem:[#allocation5] sm:$0xff]  ;;  %v219_v4 = vld [vmem:[%s190_s11] sm:$0xff]  ;;  %s266_s20 = scalar_lea.hbm %s770_s3, %s373_s23  ;;  %s218_s21 = scalar_lea.vmem [#allocation7], %s368_s30 }
  0x26   : > { %v451_v5 = vld [vmem:[%s769_s2] ss:$0 sm:$0xff]  ;;  %s268_s22 = sshll.u32 %s218_s21, 4  ;;  %s270_s18 = sshll.u32 %s266_s20, 4  ;;  %s269_s22 = int_to_ptr.vmem [resolvable:$true] %s268_s22  ;;  %s271_s18 = int_to_ptr.hbm [resolvable:$true] %s270_s18 }
  0x27   : > { %245 = vmatpush.msra.mxu0 %v222_v1  ;;  %s255_s24 = scalar_lea.sflag [#allocation4], %s715_s28  ;;  %s526_s15 = sshra.s32 %s271_s18, 4  ;;  %s527_s15 = int_to_ptr.hbm [resolvable:$true] %s526_s15 }
  0x28   : > { %s528_s25 = scalar_lea.hbm %s527_s15, 8  ;;  %s532_s6 = scalar_lea.hbm %s770_s3, 32 }
  0x29   : > { %246 = vmatpush.msra.mxu0 %v221_v2  ;;  %p529_p1 = scmp.ne.s32.totalorder %s527_s15, %s528_s25  ;;  %p533_p8 = scmp.lt.s32.totalorder %s527_s15, %s770_s3 }
  0x2a   : > { %p534_p9 = scmp.lt.s32.totalorder %s532_s6, %s528_s25 }
  0x2b   : > { %247 = vmatpush.msra.mxu0 %v220_v3  ;;  %p530_p3 = pnand %p529_p1, %p693_p2 }
  0x2c   : > { %371 = vmatmul.msk.f32.vlgmr.msra.gmra.mxu0 %vm228_vm0, %v219_v4  ;;  %p535_p10 = por %p534_p9, %p533_p8 }
  0x2d   : > { %p531_p7 = pneg %p530_p3 }
  0x2f   : > { %p536_p11 = pnand %p535_p10, %p531_p7 }
  0xa9   : > { %v249_v6 = vpop.f32.mrf.mxu0 }
  0xaa   : > { %v250_v7 = vadd.f32 %v451_v5, %v249_v6 }
  0xac   : > { %v252_v8 = vadd.f32 %v250_v7, %v219_v4 }
  0xae   : > { %253 = vst.msk [vmem:[%s218_s21] sm:$0xff] %vm228_vm0, %v252_v8 }
  0xaf   : > { %539 = shalt.err (!%p536_p11)
}
  0xb0   : > { %382 = dma.vmem_to_hbm [thread:$0]  (%p693_p2), %s269_s22, 128, %s271_s18, %s255_s24  }
  0xb1 PF: > { %p399_p12 = scmp.ge.s32.totalorder %s598_s17, 2  ;;  %s282_s28 = sand.u32 1, %s578_s12  }
  0xb2   : > { %s283_s23 = scalar_lea.sflag [#allocation4], %s282_s28 }
  0xb3   : > { %p393_p13 = pnand %p399_p12, %p701_p5 }
  0xb5   : > { %p394_p0 = pneg %p393_p13 }
  0xb7   : > { %573 = dma.done.wait (%p394_p0), %s283_s23, 128  }
  0xb8   : > { %575 = vsyncadd (%p394_p0), %s283_s23, 4294967168  ;;  %s20_s17 = sadd.s32 1, %s598_s17   ;;  %s777_s12 = smov %s582_s13 }
  0xb9   : > { %p17_p4 = scmp.ge.s32.totalorder %s20_s17, 6   ;;  %s778_s13 = smov %s586_s14 }
  0xba   : > { %s779_s14 = smov %s699_s8  ;;  %s780_s15 = smov %s594_s16 }
  0xbb   : > { %s781_s16 = smov %s783_s29  ;;  %19 = sbr.rel (!%p17_p4) target bundleno = 7 (0x7), region = 81 }
  0xc0   :  { %289 = vsyncpa [#allocation3], 1 }
  0xc1   :  { %291 = vsyncpa [#allocation3 + $0x1], 1 }
  0xc2   :  { %292 = vsyncpa [#allocation6], 1 }
  0xc3   :  { %293 = vsyncpa [#allocation4], 1 }
  0xc4   :  { %295 = vsyncpa [#allocation4 + $0x1], 1 }

</bundles_post_ra>
